<compile_context>
chip_gen: v7x
topology: tpu7x:2x2x1
jax: 0.10.0
libtpu: 0.0.40
codegen_flags: <defaults>
</compile_context>

<pallas_src>
import functools
import math

import jax
import jax.numpy as jnp
from jax.experimental import pallas as pl
from jax.experimental.pallas import tpu as pltpu

_TARGET_BLOCK_BYTES = 2 * 1024 * 1024   # ~2 MiB input blocks (v5e scoped-VMEM safe)
_LANE = 128


def _round_down(x, m):
    return (x // m) * m


def _round_up(x, m):
    return ((x + m - 1) // m) * m


# --------------------------- elementwise (sigmoid / identity) ----------------

def _sigmoid(x):
    # sigmoid(x) == 0.5*(tanh(x/2)+1): a single EUP transcendental per element.
    return 0.5 * (jnp.tanh(0.5 * x) + 1.0)


def _elemwise_none_kernel(x_ref, o_ref, *, apply_sigmoid):
    x = x_ref[...].astype(jnp.float32)
    act = _sigmoid(x) if apply_sigmoid else x
    o_ref[...] = act.astype(o_ref.dtype)


def _elemwise_reduce_kernel(x_ref, o_ref, acc_ref, *, apply_sigmoid, inner,
                            n_blocks, tile_r, lanes, valid_last, acc_rows):
    p = pl.program_id(0)          # per-core partial-sum axis ("parallel")
    i = pl.program_id(1)          # row-block axis within this partial ("arbitrary")
    g = p * inner + i             # global row-block index

    @pl.when(i == 0)
    def _init():
        acc_ref[...] = jnp.zeros_like(acc_ref)

    x = x_ref[...].astype(jnp.float32)
    act = _sigmoid(x) if apply_sigmoid else x

    def _fold(v):
        # VPU-only partial reduction into the resident scratch; the single
        # cross-lane collapse happens once in the finalize branch.
        if acc_rows == tile_r:
            return v
        if acc_rows == 8:
            return jnp.sum(v.reshape(tile_r // 8, 8, lanes), axis=0)
        return jnp.sum(v, axis=0, keepdims=True)

    if valid_last == tile_r:
        @pl.when(g < n_blocks)
        def _acc():
            acc_ref[...] += _fold(act)
    else:
        # Only the last real block can be partial: unmasked fast path elsewhere.
        @pl.when(g < n_blocks - 1)
        def _acc_full():
            acc_ref[...] += _fold(act)

        @pl.when(g == n_blocks - 1)
        def _acc_masked():
            row = jax.lax.broadcasted_iota(jnp.int32, act.shape, 0)
            acc_ref[...] += _fold(jnp.where(row < valid_last, act, 0.0))

    @pl.when(i == inner - 1)
    def _finalize():
        o_ref[...] = jnp.sum(acc_ref[...]).reshape(1, 1, 1)


def _flat2d_view(x):
    """Free (contiguous, no pad/copy) 2D view of x."""
    total = x.size
    if total % _LANE == 0:
        lanes = _LANE
        for cand in (1024, 512, 256):
            if total % cand == 0:
                lanes = cand
                break
        return x.reshape(total // lanes, lanes)
    # Ragged numel: keep the original last dim — a full-extent last dim waives
    # the 128-lane divisibility requirement, so no wrapper-side padding needed.
    last = x.shape[-1] if x.ndim >= 2 else total
    return x.reshape(-1, last)


def _elementwise_path(x, apply_sigmoid, reduction, *,
                      target_block_bytes=_TARGET_BLOCK_BYTES):
    orig_shape = x.shape
    total = x.size
    itemsize = jnp.dtype(x.dtype).itemsize

    if reduction == "none" and not apply_sigmoid:
        # identity activation + identity forward_loss + 'none' reducer
        return x

    x2 = _flat2d_view(x)
    rows, lanes = x2.shape

    # ~2 MiB blocks; second-last block dim must be a multiple of 8 or full extent.
    bytes_per_row = lanes * max(itemsize, 4)
    tile_r = max(1, target_block_bytes // bytes_per_row)
    if tile_r >= rows:
        tile_r = rows
    else:
        tile_r = max(8, _round_down(tile_r, 8))
    grid_r = pl.cdiv(rows, tile_r)
    valid_last = rows - (grid_r - 1) * tile_r

    if reduction == "none":
        out = pl.pallas_call(
            functools.partial(_elemwise_none_kernel, apply_sigmoid=apply_sigmoid),
            grid=(grid_r,),
            in_specs=[pl.BlockSpec((tile_r, lanes), lambda i: (i, 0))],
            out_specs=pl.BlockSpec((tile_r, lanes), lambda i: (i, 0)),
            out_shape=jax.ShapeDtypeStruct((rows, lanes), x.dtype),
            compiler_params=pltpu.CompilerParams(
                dimension_semantics=("parallel",)),
            cost_estimate=pl.CostEstimate(
                flops=2 * total,
                transcendentals=total if apply_sigmoid else 0,
                bytes_accessed=2 * total * itemsize),
        )(x2)
        return out.reshape(orig_shape)        # free: rows * lanes == total exactly

    # mean / sum: per-core partial sums (v7x megacore) + resident VMEM accumulator.
    num_parts = 2 if grid_r >= 2 else 1
    inner = pl.cdiv(grid_r, num_parts)
    if num_parts * inner == grid_r:
        in_index = lambda p, i: (p * inner + i, 0)
    else:
        last_block = grid_r - 1
        # Clamp duplicate tail steps to the last real block; the kernel skips
        # accumulating them (g >= n_blocks).
        in_index = lambda p, i: (jnp.minimum(p * inner + i, last_block), 0)

    if tile_r <= 8:
        acc_rows = tile_r
    elif tile_r % 8 == 0 and lanes % _LANE == 0:
        acc_rows = 8
    else:
        acc_rows = 1

    kernel = functools.partial(
        _elemwise_reduce_kernel, apply_sigmoid=apply_sigmoid, inner=inner,
        n_blocks=grid_r, tile_r=tile_r, lanes=lanes, valid_last=valid_last,
        acc_rows=acc_rows)
    partials = pl.pallas_call(
        kernel,
        grid=(num_parts, inner),
        in_specs=[pl.BlockSpec((tile_r, lanes), in_index)],
        out_specs=pl.BlockSpec((1, 1, 1), lambda p, i: (p, 0, 0)),
        out_shape=jax.ShapeDtypeStruct((num_parts, 1, 1), jnp.float32),
        scratch_shapes=[pltpu.VMEM((acc_rows, lanes), jnp.float32)],
        compiler_params=pltpu.CompilerParams(
            dimension_semantics=("parallel", "arbitrary")),
        cost_estimate=pl.CostEstimate(
            flops=3 * total,
            transcendentals=total if apply_sigmoid else 0,
            bytes_accessed=total * itemsize),
    )(x2)
    s = jnp.sum(partials)
    return s / total if reduction == "mean" else s


# --------------------------- multiclass softmax path -------------------------

def _softmax_none_kernel(x_ref, o_ref):
    x = x_ref[...].astype(jnp.float32)                 # (1, C, TL)
    m = jnp.max(x, axis=1, keepdims=True)
    e = jnp.exp(x - m)
    s = jnp.sum(e, axis=1, keepdims=True)
    # Exact reciprocal on TL elements (C-times fewer than numel) + VPU multiply.
    o_ref[...] = (e * (1.0 / s)).astype(o_ref.dtype)


def _softmax_reduce_kernel(x_ref, o_ref, acc_ref, *, grid_l, tile_l, valid_last):
    l = pl.program_id(1)

    @pl.when(l == 0)
    def _init():
        acc_ref[...] = jnp.zeros_like(acc_ref)

    x = x_ref[...].astype(jnp.float32)                 # (1, C, TL)
    m = jnp.max(x, axis=1, keepdims=True)
    e = jnp.exp(x - m)
    s = jnp.sum(e, axis=1, keepdims=True)
    p = e * (1.0 / s)
    partial = jnp.sum(p, axis=1)                       # (1, TL)

    if valid_last == tile_l:
        acc_ref[...] += partial
    else:
        @pl.when(l < grid_l - 1)
        def _full():
            acc_ref[...] += partial

        @pl.when(l == grid_l - 1)
        def _masked():
            lane = jax.lax.broadcasted_iota(jnp.int32, partial.shape, 1)
            acc_ref[...] += jnp.where(lane < valid_last, partial, 0.0)

    @pl.when(l == grid_l - 1)
    def _finalize():
        o_ref[...] = jnp.sum(acc_ref[...]).reshape(1, 1, 1)


def _softmax_path(x, reduction, *, target_block_bytes=_TARGET_BLOCK_BYTES):
    orig_shape = x.shape
    n, c = x.shape[0], x.shape[1]
    hw = math.prod(x.shape[2:]) if x.ndim > 2 else 1
    total = x.size
    itemsize = jnp.dtype(x.dtype).itemsize
    x3 = x.reshape(n, c, hw)                           # free (contiguous) view

    # Size tile_l for ~2 MiB blocks, counting 8-sublane padding for small C
    # (keeps v7x' smaller VMEM happy while amortizing per-step overhead).
    rows_eff = _round_up(max(c, 1), 8)
    tile_l = max(_LANE, _round_down(
        target_block_bytes // (rows_eff * max(itemsize, 4)), _LANE))
    if tile_l >= hw:
        tile_l = hw                                    # full extent: constraint waived
    grid_l = pl.cdiv(hw, tile_l)
    valid_last = hw - (grid_l - 1) * tile_l

    if reduction == "none":
        out = pl.pallas_call(
            _softmax_none_kernel,
            grid=(n, grid_l),
            in_specs=[pl.BlockSpec((1, c, tile_l), lambda b, l: (b, 0, l))],
            out_specs=pl.BlockSpec((1, c, tile_l), lambda b, l: (b, 0, l)),
            out_shape=jax.ShapeDtypeStruct((n, c, hw), x.dtype),
            compiler_params=pltpu.CompilerParams(
                dimension_semantics=("parallel", "parallel")),
            cost_estimate=pl.CostEstimate(
                flops=5 * total,
                transcendentals=total + n * hw,
                bytes_accessed=2 * total * itemsize),
        )(x3)
        return out.reshape(orig_shape)

    # mean / sum: per-batch partial sums ("parallel" batch axis -> v7x 2-TC split).
    kernel = functools.partial(
        _softmax_reduce_kernel, grid_l=grid_l, tile_l=tile_l,
        valid_last=valid_last)
    partials = pl.pallas_call(
        kernel,
        grid=(n, grid_l),
        in_specs=[pl.BlockSpec((1, c, tile_l), lambda b, l: (b, 0, l))],
        out_specs=pl.BlockSpec((1, 1, 1), lambda b, l: (b, 0, 0)),
        out_shape=jax.ShapeDtypeStruct((n, 1, 1), jnp.float32),
        scratch_shapes=[pltpu.VMEM((1, tile_l), jnp.float32)],
        compiler_params=pltpu.CompilerParams(
            dimension_semantics=("parallel", "arbitrary")),
        cost_estimate=pl.CostEstimate(
            flops=5 * total,
            transcendentals=total + n * hw,
            bytes_accessed=total * itemsize),
    )(x3)
    s = jnp.sum(partials)
    return s / total if reduction == "mean" else s


# --------------------------- public wrapper -----------------------------------

def base_loss(inputs, targets=None, *, logits=True, multiclass=False,
              reduction="mean"):
    """JAX/Pallas equivalent of Base(logits, multiclass, reduction)(inputs, targets).

    `targets` is accepted for API parity but never touched (and never DMA'd):
    Base.forward_loss is abstract -> identity here.
    """
    del targets  # TODO(synk): used only by subclass-specific forward_loss.
    if reduction not in ("none", "mean", "sum"):
        raise ValueError(f"unsupported reduction: {reduction}")
    if logits and multiclass:
        return _softmax_path(inputs, reduction)
    # sigmoid if logits (and not multiclass), otherwise identity activation.
    return _elementwise_path(inputs, apply_sigmoid=logits, reduction=reduction)


# --------------------------- reference & self-test ----------------------------

def _reference(x, *, logits=True, multiclass=False, reduction="mean"):
    x = x.astype(jnp.float32)
    if logits:
        x = jax.nn.softmax(x, axis=1) if multiclass else jax.nn.sigmoid(x)
    if reduction == "mean":
        return jnp.mean(x)
    if reduction == "sum":
        return jnp.sum(x)
    return x


if __name__ == "__main__":
    key = jax.random.PRNGKey(0)
    k1, k2, k3, k4, k5 = jax.random.split(key, 5)

    # Small NCHW shapes consistent with a per-pixel classification loss.
    x = jax.random.normal(k1, (2, 4, 16, 16), dtype=jnp.float32)
    t = (jax.random.uniform(k2, (2, 4, 16, 16)) > 0.5).astype(jnp.float32)

    # 1) Default Base config: logits=True, multiclass=False, reduction='mean'.
    out = jax.block_until_ready(base_loss(x, t))
    ref = _reference(x)
    assert jnp.allclose(out, ref, rtol=1e-5, atol=1e-5), (out, ref)

    # 2) Multiclass softmax, sum (exact normalization -> tight tolerance).
    out2 = jax.block_until_ready(base_loss(x, t, multiclass=True, reduction="sum"))
    ref2 = _reference(x, multiclass=True, reduction="sum")
    assert jnp.allclose(out2, ref2, rtol=1e-5, atol=1e-3), (out2, ref2)

    # 3) 'none' reduction, sigmoid path (elementwise output, input dtype).
    out3 = jax.block_until_ready(base_loss(x, t, reduction="none"))
    ref3 = _reference(x, reduction="none")
    assert out3.shape == x.shape and out3.dtype == x.dtype
    assert jnp.allclose(out3, ref3, rtol=1e-5, atol=1e-5)

    # 4) 'none' reduction, multiclass softmax path.
    out4 = jax.block_until_ready(base_loss(x, t, multiclass=True, reduction="none"))
    ref4 = _reference(x, multiclass=True, reduction="none")
    assert jnp.allclose(out4, ref4, rtol=1e-5, atol=1e-5)

    # 5) logits=False -> identity activation, sum reduction.
    out5 = jax.block_until_ready(base_loss(x, t, logits=False, reduction="sum"))
    ref5 = _reference(x, logits=False, reduction="sum")
    assert jnp.allclose(out5, ref5, rtol=1e-5, atol=1e-3), (out5, ref5)

    # 6) Ragged numel (not a multiple of 128): free view path, no pad/slice.
    xr = jax.random.normal(k3, (2, 3, 15, 15), dtype=jnp.float32)
    out6 = jax.block_until_ready(base_loss(xr, None))
    ref6 = _reference(xr)
    assert jnp.allclose(out6, ref6, rtol=1e-5, atol=1e-5), (out6, ref6)

    # 7) Forced multi-block ragged reduce: per-core partials + clamped grid +
    #    masked partial last block (small target block bytes).
    out7 = jax.block_until_ready(
        _elementwise_path(xr, apply_sigmoid=True, reduction="sum",
                          target_block_bytes=40 * 15 * 4))
    ref7 = _reference(xr, reduction="sum")
    assert jnp.allclose(out7, ref7, rtol=1e-5, atol=1e-3), (out7, ref7)

    # 8) Forced multi-block lane-dense reduce (even per-core split, vector acc).
    xb = jax.random.normal(k4, (4, 8, 32, 32), dtype=jnp.float32)
    out8 = jax.block_until_ready(
        _elementwise_path(xb, apply_sigmoid=True, reduction="mean",
                          target_block_bytes=8 * 1024 * 4))
    ref8 = _reference(xb)
    assert jnp.allclose(out8, ref8, rtol=1e-5, atol=1e-5), (out8, ref8)

    # 9) Forced tiled softmax (tile_l=128 over hw=576, masked partial last tile).
    xm = jax.random.normal(k5, (1, 4, 24, 24), dtype=jnp.float32)
    out9 = jax.block_until_ready(
        _softmax_path(xm, "mean", target_block_bytes=128 * 8 * 4))
    ref9 = _reference(xm, multiclass=True)
    assert jnp.allclose(out9, ref9, rtol=1e-5, atol=1e-5), (out9, ref9)
    out10 = jax.block_until_ready(
        _softmax_path(xm, "none", target_block_bytes=128 * 8 * 4))
    ref10 = _reference(xm, multiclass=True, reduction="none")
    assert jnp.allclose(out10, ref10, rtol=1e-5, atol=1e-5)

    print("KERNEL_OK")
</pallas_src>

<mosaic_0001>
module attributes {stable_mosaic.version = 11 : i64} {
  func.func @_elemwise_reduce_kernel(%arg0: i32, %arg1: i32, %arg2: memref<2x1024xf32, #tpu.memory_space<vmem>>, %arg3: memref<1x1x1xf32, #tpu.memory_space<vmem>>, %arg4: memref<2x1024xf32, #tpu.memory_space<vmem>>) attributes {dimension_semantics = [#tpu.dimension_semantics<parallel>, #tpu.dimension_semantics<arbitrary>], iteration_bounds = array<i64: 1, 1>, scalar_prefetch = 0 : i64, scratch_operands = 1 : i64, tpu.core_type = #tpu.core_type<tc>, window_params = [{transform_indices = @transform_0, window_bounds = array<i64: 2, 1024>}, {transform_indices = @transform_1, window_bounds = array<i64: 1, 1, 1>}]} {
    %c1_i32 = arith.constant 1 : i32
    %0 = arith.muli %arg0, %c1_i32 : i32
    %1 = arith.addi %0, %arg1 : i32
    %c0_i32 = arith.constant 0 : i32
    %2 = arith.cmpi eq, %arg1, %c0_i32 : i32
    %3 = arith.extui %2 : i1 to i32
    %c0_i32_0 = arith.constant 0 : i32
    %4 = arith.cmpi ne, %3, %c0_i32_0 : i32
    scf.if %4 {
      %cst_8 = arith.constant 0.000000e+00 : f32
      %19 = vector.broadcast %cst_8 : f32 to vector<2x1024xf32>
      %c0_9 = arith.constant 0 : index
      %c0_10 = arith.constant 0 : index
      %20 = vector.load %arg4[%c0_9, %c0_10] : memref<2x1024xf32, #tpu.memory_space<vmem>>, vector<2x1024xf32>
      tpu.vector_store %arg4[%c0_9, %c0_10], %19 {strides = array<i32>} : memref<2x1024xf32, #tpu.memory_space<vmem>>, vector<2x1024xf32>,
    } else {
    }
    %c0 = arith.constant 0 : index
    %c0_1 = arith.constant 0 : index
    %5 = vector.load %arg2[%c0, %c0_1] : memref<2x1024xf32, #tpu.memory_space<vmem>>, vector<2x1024xf32>
    %cst = arith.constant 5.000000e-01 : f32
    %6 = vector.broadcast %cst : f32 to vector<2x1024xf32>
    %7 = arith.mulf %6, %5 : vector<2x1024xf32>
    %8 = math.tanh %7 : vector<2x1024xf32>
    %cst_2 = arith.constant 1.000000e+00 : f32
    %9 = vector.broadcast %cst_2 : f32 to vector<2x1024xf32>
    %10 = arith.addf %8, %9 : vector<2x1024xf32>
    %cst_3 = arith.constant 5.000000e-01 : f32
    %11 = vector.broadcast %cst_3 : f32 to vector<2x1024xf32>
    %12 = arith.mulf %11, %10 : vector<2x1024xf32>
    %c1_i32_4 = arith.constant 1 : i32
    %13 = arith.cmpi slt, %1, %c1_i32_4 : i32
    %14 = arith.extui %13 : i1 to i32
    %c0_i32_5 = arith.constant 0 : i32
    %15 = arith.cmpi ne, %14, %c0_i32_5 : i32
    scf.if %15 {
      %c0_8 = arith.constant 0 : index
      %c0_9 = arith.constant 0 : index
      %19 = vector.load %arg4[%c0_8, %c0_9] : memref<2x1024xf32, #tpu.memory_space<vmem>>, vector<2x1024xf32>
      %20 = arith.addf %19, %12 : vector<2x1024xf32>
      %c0_10 = arith.constant 0 : index
      %c0_11 = arith.constant 0 : index
      %21 = vector.load %arg4[%c0_10, %c0_11] : memref<2x1024xf32, #tpu.memory_space<vmem>>, vector<2x1024xf32>
      tpu.vector_store %arg4[%c0_10, %c0_11], %20 {strides = array<i32>} : memref<2x1024xf32, #tpu.memory_space<vmem>>, vector<2x1024xf32>,
    } else {
    }
    %c0_i32_6 = arith.constant 0 : i32
    %16 = arith.cmpi eq, %arg1, %c0_i32_6 : i32
    %17 = arith.extui %16 : i1 to i32
    %c0_i32_7 = arith.constant 0 : i32
    %18 = arith.cmpi ne, %17, %c0_i32_7 : i32
    scf.if %18 {
      %c0_8 = arith.constant 0 : index
      %c0_9 = arith.constant 0 : index
      %19 = vector.load %arg4[%c0_8, %c0_9] : memref<2x1024xf32, #tpu.memory_space<vmem>>, vector<2x1024xf32>
      %20 = vector.shape_cast %19 : vector<2x1024xf32> to vector<1x2x1024xf32>
      %cst_10 = arith.constant dense<0.000000e+00> : vector<1xf32>
      %21 = vector.multi_reduction <add>, %20, %cst_10 [1, 2] : vector<1x2x1024xf32> to vector<1xf32>
      %22 = vector.shape_cast %21 : vector<1xf32> to vector<1x1x1xf32>
      %23 = vector.extract %22[0, 0, 0] : f32 from vector<1x1x1xf32>
      %24 = vector.broadcast %23 : f32 to vector<1x1x1xf32>
      %c0_11 = arith.constant 0 : index
      %c0_12 = arith.constant 0 : index
      %c0_13 = arith.constant 0 : index
      %25 = vector.load %arg3[%c0_11, %c0_12, %c0_13] : memref<1x1x1xf32, #tpu.memory_space<vmem>>, vector<1x1x1xf32>
      tpu.vector_store %arg3[%c0_11, %c0_12, %c0_13], %24 {strides = array<i32>} : memref<1x1x1xf32, #tpu.memory_space<vmem>>, vector<1x1x1xf32>,
    } else {
    }
    return
  }
  func.func @transform_0(%arg0: i32, %arg1: i32) -> (i32, i32) {
    %c1_i32 = arith.constant 1 : i32
    %0 = arith.muli %arg0, %c1_i32 : i32
    %1 = arith.addi %0, %arg1 : i32
    %c0_i32 = arith.constant 0 : i32
    %c0_i32_0 = arith.constant 0 : i32
    return %1, %c0_i32 : i32, i32
  }
  func.func @transform_1(%arg0: i32, %arg1: i32) -> (i32, i32, i32) {
    %c0_i32 = arith.constant 0 : i32
    %c0_i32_0 = arith.constant 0 : i32
    %c0_i32_1 = arith.constant 0 : i32
    return %arg0, %c0_i32, %c0_i32_0 : i32, i32, i32
  }
}

</mosaic_0001>

<bundles_post_ra>
// kernel: tpu_custom_call.1
= control target key start
LH: loop header
LB: loop body
LE: loop exit
PB: predicated region body
PF: predicated region fallthrough
CT: control target
= control target key end

     0   :  { %6 = vsyncpa [#allocation4], 0  ;;  %s247_s0 = inlined_call_operand.hbm [shape: f32[2,1024], index: 0, kind: input, shape index: {}]   ;;  %s248_s1 = inlined_call_operand.hbm [shape: f32[1,1,1], index: 1, kind: output, shape index: {}]  }
   0x1   :  { %7 = vsyncpa [#allocation5], 0  ;;  %s202_s6 = smov [#allocation3]   ;;  %s154_s10 = scalar_lea.hbm %s247_s0, 256 }
   0x2   :  { %s18_s7 = sshll.u32 %s202_s6, 4  ;;  %p155_p0 = scmp.ne.s32.totalorder %s247_s0, %s154_s10  ;;  %s19_s7 = int_to_ptr.vmem [resolvable:$true] %s18_s7 }
   0x3   :  { %p158_p1 = scmp.lt.u32.totalorder %s154_s10, %s247_s0 }
   0x5   :  { %p160_p2 = pnand %p158_p1, %p155_p0 }
   0x7   :  { %163 = shalt.err (!%p160_p2)
}
   0x8   :  { %s164_s15 = scalar_lea.vmem %s19_s7, 256  ;;  %p169_p4 = scmp.lt.s32.totalorder %s19_s7, %s19_s7 }
   0x9   :  { %p165_p3 = scmp.ne.s32.totalorder %s19_s7, %s164_s15  ;;  %p170_p5 = scmp.lt.s32.totalorder %s164_s15, %s164_s15 }
   0xb   :  { %p171_p6 = por %p170_p5, %p169_p4 }
   0xd   :  { %p172_p7 = pnand %p171_p6, %p165_p3 }
   0xf   :  { %175 = shalt.err (!%p172_p7)
}
  0x10   :  { %21 = dma.hbm_to_vmem [thread:$0]  %s247_s0, 256, %s19_s7, [#allocation4]  }
  0x11   :  { %198 = dma.done.wait [#allocation4], 256  }
  0x12   :  { %199 = vsyncadd [#allocation4], 4294967040  ;;  %v33_v0 = vld [vmem:[#allocation3] sm:$0xff]  ;;  %v34_v1 = vld [vmem:[#allocation3 + $0x8] sm:$0xff]  ;;  %v203_v4 = vmov 1983009808   ;;  %v64_v6 = vlaneseq }
  0x13   :  { %v35_v2 = vmul.f32 0.5, %v33_v0  ;;  %v36_v3 = vmul.f32 0.5, %v34_v1  ;;  %v62_v5 = vunpack.c.l.s4 %v203_v4  ;;  %vm102_vm0 = vcmask 1041408   ;;  %s204_s0 = smov [#allocation6]  }
  0x14   :  { %v65_v8 = vshrl.u32 %v64_v6, 7  ;;  %s136_s18 = sshll.u32 %s204_s0, 4  ;;  %vm128_vm1 = vcmask 0   ;;  %s137_s18 = int_to_ptr.vmem [resolvable:$true] %s136_s18 }
  0x15   :  { %150 = vtanh.f32 %v35_v2  ;;  %v63_v7 = vunpack.c.0.s8 %v62_v5  ;;  %s176_s20 = scalar_lea.vmem %s137_s18, 16  ;;  %s180_s21 = scalar_lea.vmem %s137_s18, 32 }
  0x16   :  { %152 = vtanh.f32 %v36_v3  ;;  %p177_p8 = scmp.ne.s32.totalorder %s137_s18, %s176_s20  ;;  %p181_p9 = scmp.lt.s32.totalorder %s137_s18, %s137_s18 }
  0x17   :  { %v66_v12 = vsub.s32 %v63_v7, %v65_v8  ;;  %p182_p10 = scmp.lt.s32.totalorder %s180_s21, %s176_s20 }
  0x19   :  { %p183_p11 = por %p182_p10, %p181_p9 }
  0x1b   :  { %p184_p12 = pnand %p183_p11, %p177_p8 }
  0x1f   :  { %v151_v9 = vpop.eup %150 }
  0x20   :  { %v153_v10 = vpop.eup %152  ;;  %v39_v11 = vadd.f32 1.0, %v151_v9 }
  0x21   :  { %v40_v13 = vadd.f32 1.0, %v153_v10 }
  0x22   :  { %v41_v14 = vmul.f32 0.5, %v39_v11 }
  0x23   :  { %v42_v15 = vmul.f32 0.5, %v40_v13 }
  0x24   :  { %v60_v16 = vcombine.high %v41_v14, %v41_v14  ;;  %v67_v17 = vrot.slane %v41_v14, %v66_v12 }
  0x25   :  { %v77_v18 = vcombine.high %v42_v15, %v42_v15  ;;  %v84_v21 = vrot.slane %v42_v15, %v66_v12 }
  0x26   :  { %v74_v19 = vrot.slane %v60_v16, %v66_v12  ;;  %v75_v20 = vcombine.high %v67_v17, %v67_v17  ;;  %v103_v22 = vsel %vm102_vm0, %v67_v17, 0.0 }
  0x27   :  { %v91_v27 = vrot.slane %v77_v18, %v66_v12  ;;  %v92_v28 = vcombine.high %v84_v21, %v84_v21  ;;  %v110_v31 = vsel %vm102_vm0, %v84_v21, 0.0 }
  0x28   :  { %v76_v23 = vcombine.high %v74_v19, %v74_v19  ;;  %v104_v24 = vsel %vm102_vm0, %v75_v20, 0.0  ;;  %v106_v25 = vsel %vm102_vm0, %v74_v19, 0.0 }
  0x29   :  { %v105_v26 = vadd.f32 %v104_v24, %v103_v22  ;;  %v93_v33 = vcombine.high %v91_v27, %v91_v27  ;;  %v112_v34 = vsel %vm102_vm0, %v92_v28, 0.0  ;;  %v114_v36 = vsel %vm102_vm0, %v91_v27, 0.0 }
  0x2a   :  { %v108_v29 = vsel %vm102_vm0, %v76_v23, 0.0 }
  0x2b   :  { %v107_v30 = vadd.f32 %v106_v25, %v105_v26  ;;  %v116_v38 = vsel %vm102_vm0, %v93_v33, 0.0 }
  0x2d   :  { %v109_v32 = vadd.f32 %v108_v29, %v107_v30 }
  0x2f   :  { %v111_v35 = vadd.f32 %v110_v31, %v109_v32 }
  0x31   :  { %v113_v37 = vadd.f32 %v112_v34, %v111_v35 }
  0x33   :  { %v115_v39 = vadd.f32 %v114_v36, %v113_v37 }
  0x35   :  { %v117_v40 = vadd.f32 %v116_v38, %v115_v39 }
  0x37   :  { %118 = vadd.xlane.f32.xlu0 %v117_v40 }
  0xc4   :  { %v119_v41 = vpop.xlane.xlu0 %118 }
  0xc5   :  { %v120_v42 = vrot.slane %v119_v41, 4 }
  0xc7   :  { %v121_v43 = vadd.f32 %v120_v42, %v119_v41 }
  0xc9   :  { %v122_v44 = vrot.slane %v121_v43, 2 }
  0xcb   :  { %v123_v45 = vadd.f32 %v122_v44, %v121_v43 }
  0xcd   :  { %v124_v46 = vrot.slane %v123_v45, 1 }
  0xcf   :  { %v125_v47 = vadd.f32 %v124_v46, %v123_v45 }
  0xd1   :  { %145 = vpush %v125_v47 }
 0x102   :  { %s146_s19 = spop %145 }
 0x103   :  { %v127_v48 = vstv %s146_s19 }
 0x104   :  { %129 = vst.msk [vmem:[#allocation6] sm:$0x1] %vm128_vm1, %v127_v48 }
 0x105   :  { %187 = shalt.err (!%p184_p12)
}
 0x106   :  { %s188_s24 = scalar_lea.hbm %s248_s1, 16 }
 0x107   :  { %p189_p13 = scmp.ne.s32.totalorder %s248_s1, %s188_s24  ;;  %p192_p0 = scmp.lt.u32.totalorder %s188_s24, %s248_s1 }
 0x109   :  { %p194_p1 = pnand %p192_p0, %p189_p13 }
 0x10b   :  { %197 = shalt.err (!%p194_p1)
}
 0x10c   :  { %139 = dma.vmem_to_hbm [thread:$0]  %s137_s18, 16, %s248_s1, [#allocation5]  }
 0x10d   :  { %200 = dma.done.wait [#allocation5], 16  }
 0x10e   :  { %201 = vsyncadd [#allocation5], 4294967280 }
 0x10f   :  { %143 = vsyncpa [#allocation4], 1 }
 0x110   :  { %144 = vsyncpa [#allocation5], 1 }

</bundles_post_ra>
